<compile_context>
chip_gen: v5e
topology: v5e:2x2
jax: 0.10.0
libtpu: 0.0.40
codegen_flags: <defaults>
</compile_context>

<pallas_src>
import functools

import jax
import jax.numpy as jnp
from jax.experimental import pallas as pl
from jax.experimental.pallas import tpu as pltpu

INTERVAL = 144  # hard-coded in the reference model


def _persistence_kernel(x_ref, y_ref, sem, *, seq_len, pred_len, C):
    # x_ref: (B, seq_len * C)  float32, HBM (pl.ANY)
    # y_ref: (B, pred_len * C) float32, HBM (pl.ANY)
    # sem:   DMA semaphores, shape (2,)
    src_start = (seq_len - INTERVAL) * C      # start of the trailing window
    head = INTERVAL * C                       # first pred region: 144 steps

    # y[:, 0:144, :] = x[:, -144:, :]   (contiguous run per batch row)
    cp_head = pltpu.make_async_copy(
        x_ref.at[:, pl.ds(src_start, head)],
        y_ref.at[:, pl.ds(0, head)],
        sem.at[0],
    )
    cp_head.start()

    if pred_len > INTERVAL:
        # y[:, 144:pred_len, :] = x[:, -144 : -288 + pred_len, :]
        tail = (pred_len - INTERVAL) * C
        cp_tail = pltpu.make_async_copy(
            x_ref.at[:, pl.ds(src_start, tail)],
            y_ref.at[:, pl.ds(head, tail)],
            sem.at[1],
        )
        cp_tail.start()
        cp_tail.wait()

    cp_head.wait()
    # Both regions together cover [0, pred_len*C): full overwrite, so no
    # zero-init is needed (matches torch.zeros + full overwrite).


def persistence_forward(x_enc, pred_len):
    """x_enc: (B, seq_len, C) -> y: (B, pred_len, C) float32."""
    B, seq_len, C = x_enc.shape
    assert seq_len >= INTERVAL, (seq_len, INTERVAL)
    # The reference slicing is only well-defined for 144 <= pred_len < 288.
    assert INTERVAL <= pred_len < 2 * INTERVAL, (pred_len, INTERVAL)

    # Reference always produces float32 (torch.zeros); a DMA cannot convert
    # dtype, so cast up-front (no-op for the common float32 input path).
    x32 = x_enc.astype(jnp.float32)
    # Flatten (T, C) -> T*C: every copied region becomes a single contiguous
    # run per batch row. Reshape of a contiguous array is free in XLA.
    x_flat = x32.reshape(B, seq_len * C)

    kernel = functools.partial(
        _persistence_kernel, seq_len=seq_len, pred_len=pred_len, C=C
    )

    y_flat = pl.pallas_call(
        kernel,
        out_shape=jax.ShapeDtypeStruct((B, pred_len * C), jnp.float32),
        in_specs=[pl.BlockSpec(memory_space=pl.ANY)],   # keep input in HBM
        out_specs=pl.BlockSpec(memory_space=pl.ANY),    # write output in HBM
        scratch_shapes=[pltpu.SemaphoreType.DMA((2,))],
    )(x_flat)

    return y_flat.reshape(B, pred_len, C)


def _reference(x_enc, pred_len):
    """Pure-JAX reference mirroring the torch code."""
    B, seq_len, C = x_enc.shape
    y = jnp.zeros((B, pred_len, C), jnp.float32)
    y = y.at[:, 0:INTERVAL, :].set(
        x_enc[:, seq_len - INTERVAL:, :].astype(jnp.float32))
    if pred_len > INTERVAL:
        y = y.at[:, INTERVAL:pred_len, :].set(
            x_enc[:, seq_len - INTERVAL: seq_len - 2 * INTERVAL + pred_len, :]
            .astype(jnp.float32))
    return y


if __name__ == "__main__":
    # Small shapes consistent with the module: pred_len must be >= 144.
    B, seq_len, pred_len, c_out = 2, 288, 192, 8

    key = jax.random.PRNGKey(0)
    x_enc = jax.random.normal(key, (B, seq_len, c_out), dtype=jnp.float32)

    y = persistence_forward(x_enc, pred_len)
    y = jax.block_until_ready(y)

    y_ref = _reference(x_enc, pred_len)
    assert y.shape == (B, pred_len, c_out), y.shape
    assert y.dtype == jnp.float32, y.dtype
    assert bool(jnp.array_equal(y, y_ref)), "mismatch vs reference"

    print("KERNEL_OK")
</pallas_src>

<mosaic_0001>
module attributes {stable_mosaic.version = 11 : i64} {
  func.func @_persistence_kernel(%arg0: memref<2x2304xf32, #tpu.memory_space<any>>, %arg1: memref<2x1536xf32, #tpu.memory_space<any>>, %arg2: memref<2x!tpu.dma_semaphore, #tpu.memory_space<semaphore_mem>>) attributes {dimension_semantics = [], scalar_prefetch = 0 : i64, scratch_operands = 1 : i64, tpu.core_type = #tpu.core_type<tc>} {
    %c0_i32 = arith.constant 0 : i32
    %c0_i32_0 = arith.constant 0 : i32
    %c1152_i32 = arith.constant 1152 : i32
    %0 = tpu.memref_slice %arg0[%c0_i32_0, %c1152_i32] : memref<2x2304xf32, #tpu.memory_space<any>> -> memref<2x1152xf32, #tpu.memory_space<any>>
    %c0_i32_1 = arith.constant 0 : i32
    %c0_i32_2 = arith.constant 0 : i32
    %1 = tpu.memref_slice %arg1[%c0_i32_1, %c0_i32_2] : memref<2x1536xf32, #tpu.memory_space<any>> -> memref<2x1152xf32, #tpu.memory_space<any>>
    %2 = tpu.memref_slice %arg2[%c0_i32] : memref<2x!tpu.dma_semaphore, #tpu.memory_space<semaphore_mem>> -> memref<1x!tpu.dma_semaphore, #tpu.memory_space<semaphore_mem>>
    %3 = tpu.memref_squeeze %2 : memref<1x!tpu.dma_semaphore, #tpu.memory_space<semaphore_mem>> -> memref<!tpu.dma_semaphore, #tpu.memory_space<semaphore_mem>>
    tpu.enqueue_dma source(%0 : memref<2x1152xf32, #tpu.memory_space<any>>) target(%1 : memref<2x1152xf32, #tpu.memory_space<any>>) target_semaphore(%3 : memref<!tpu.dma_semaphore, #tpu.memory_space<semaphore_mem>>)
    %c1_i32 = arith.constant 1 : i32
    %c0_i32_3 = arith.constant 0 : i32
    %c1152_i32_4 = arith.constant 1152 : i32
    %4 = tpu.memref_slice %arg0[%c0_i32_3, %c1152_i32_4] : memref<2x2304xf32, #tpu.memory_space<any>> -> memref<2x384xf32, #tpu.memory_space<any>>
    %c0_i32_5 = arith.constant 0 : i32
    %c1152_i32_6 = arith.constant 1152 : i32
    %5 = tpu.memref_slice %arg1[%c0_i32_5, %c1152_i32_6] : memref<2x1536xf32, #tpu.memory_space<any>> -> memref<2x384xf32, #tpu.memory_space<any>>
    %6 = tpu.memref_slice %arg2[%c1_i32] : memref<2x!tpu.dma_semaphore, #tpu.memory_space<semaphore_mem>> -> memref<1x!tpu.dma_semaphore, #tpu.memory_space<semaphore_mem>>
    %7 = tpu.memref_squeeze %6 : memref<1x!tpu.dma_semaphore, #tpu.memory_space<semaphore_mem>> -> memref<!tpu.dma_semaphore, #tpu.memory_space<semaphore_mem>>
    tpu.enqueue_dma source(%4 : memref<2x384xf32, #tpu.memory_space<any>>) target(%5 : memref<2x384xf32, #tpu.memory_space<any>>) target_semaphore(%7 : memref<!tpu.dma_semaphore, #tpu.memory_space<semaphore_mem>>)
    %c1_i32_7 = arith.constant 1 : i32
    %c0_i32_8 = arith.constant 0 : i32
    %c1152_i32_9 = arith.constant 1152 : i32
    %8 = tpu.memref_slice %arg0[%c0_i32_8, %c1152_i32_9] : memref<2x2304xf32, #tpu.memory_space<any>> -> memref<2x384xf32, #tpu.memory_space<any>>
    %c0_i32_10 = arith.constant 0 : i32
    %c1152_i32_11 = arith.constant 1152 : i32
    %9 = tpu.memref_slice %arg1[%c0_i32_10, %c1152_i32_11] : memref<2x1536xf32, #tpu.memory_space<any>> -> memref<2x384xf32, #tpu.memory_space<any>>
    %10 = tpu.memref_slice %arg2[%c1_i32_7] : memref<2x!tpu.dma_semaphore, #tpu.memory_space<semaphore_mem>> -> memref<1x!tpu.dma_semaphore, #tpu.memory_space<semaphore_mem>>
    %11 = tpu.memref_squeeze %10 : memref<1x!tpu.dma_semaphore, #tpu.memory_space<semaphore_mem>> -> memref<!tpu.dma_semaphore, #tpu.memory_space<semaphore_mem>>
    tpu.wait_dma2 semaphore(%11 : memref<!tpu.dma_semaphore, #tpu.memory_space<semaphore_mem>>) src(%8 : memref<2x384xf32, #tpu.memory_space<any>>) dst(%9 : memref<2x384xf32, #tpu.memory_space<any>>)
    %c0_i32_12 = arith.constant 0 : i32
    %c0_i32_13 = arith.constant 0 : i32
    %c1152_i32_14 = arith.constant 1152 : i32
    %12 = tpu.memref_slice %arg0[%c0_i32_13, %c1152_i32_14] : memref<2x2304xf32, #tpu.memory_space<any>> -> memref<2x1152xf32, #tpu.memory_space<any>>
    %c0_i32_15 = arith.constant 0 : i32
    %c0_i32_16 = arith.constant 0 : i32
    %13 = tpu.memref_slice %arg1[%c0_i32_15, %c0_i32_16] : memref<2x1536xf32, #tpu.memory_space<any>> -> memref<2x1152xf32, #tpu.memory_space<any>>
    %14 = tpu.memref_slice %arg2[%c0_i32_12] : memref<2x!tpu.dma_semaphore, #tpu.memory_space<semaphore_mem>> -> memref<1x!tpu.dma_semaphore, #tpu.memory_space<semaphore_mem>>
    %15 = tpu.memref_squeeze %14 : memref<1x!tpu.dma_semaphore, #tpu.memory_space<semaphore_mem>> -> memref<!tpu.dma_semaphore, #tpu.memory_space<semaphore_mem>>
    tpu.wait_dma2 semaphore(%15 : memref<!tpu.dma_semaphore, #tpu.memory_space<semaphore_mem>>) src(%12 : memref<2x1152xf32, #tpu.memory_space<any>>) dst(%13 : memref<2x1152xf32, #tpu.memory_space<any>>)
    return
  }
}

</mosaic_0001>

<bundles_post_ra>
// kernel: tpu_custom_call.1
= control target key start
LH: loop header
LB: loop body
LE: loop exit
PB: predicated region body
PF: predicated region fallthrough
CT: control target
= control target key end

     0   :  { %s62_s13 = smov [#allocation2]   ;;  %s63_s14 = smov [#allocation3]   ;;  %s86_s0 = inlined_call_operand.hbm [shape: f32[2,2304], index: 0, kind: input, shape index: {}]   ;;  %s87_s1 = inlined_call_operand.hbm [shape: f32[2,1536], index: 1, kind: output, shape index: {}]  }
   0x1   :  { %s6_s8 = scalar_lea.hbm %s86_s0, 18  ;;  %s13_s11 = sshll.u32 %s87_s1, 4  ;;  %s14_s11 = int_to_ptr.hbm [resolvable:$true] %s13_s11 }
   0x2   :  { %s11_s12 = sshll.u32 %s6_s8, 4  ;;  %s64_s15 = smov 0   ;;  %s12_s12 = int_to_ptr.hbm [resolvable:$true] %s11_s12 }
   0x3   :  { %17 = dma.general %s12_s12, 288, %s14_s11, %s62_s13, %s63_s14, [#allocation4], %s64_s15, 0  }
   0x4   :  { %s18_s18 = scalar_lea.hbm %s87_s1, 18  ;;  %s65_s20 = smov [#allocation2 + $0x1]  }
   0x5   :  { %s26_s19 = sshll.u32 %s18_s18, 4  ;;  %s66_s21 = smov [#allocation5]   ;;  %s27_s19 = int_to_ptr.hbm [resolvable:$true] %s26_s19 }
   0x6   :  { %30 = dma.general %s12_s12, 96, %s27_s19, %s65_s20, %s66_s21, [#allocation6], %s64_s15, 0  }
   0x7   :  { %58 = dma.done.wait [#allocation2 + $0x1], 96 }
   0x8   :  { %59 = vsyncadd [#allocation2 + $0x1], 4294967200 }
   0x9   :  { %60 = dma.done.wait [#allocation2], 288 }
   0xa   :  { %61 = vsyncadd [#allocation2], 4294967008 }
   0xb   :  { %38 = vsyncmov [#allocation2] }
   0xe   :  { %s39_s0 = vpop.sfrf %38 }
   0xf   :  { %p51_p0 = scmp.ne.s32.totalorder %s39_s0, 0 }
  0x11   :  { %43 = shalt.err (%p51_p0)  }
  0x12   :  { %45 = vsyncmov [#allocation2 + $0x1] }
  0x15   :  { %s46_s22 = vpop.sfrf %45 }
  0x16   :  { %p52_p1 = scmp.ne.s32.totalorder %s46_s22, 0 }
  0x18   :  { %50 = shalt.err (%p52_p1)  }

</bundles_post_ra>
